<compile_context>
chip_gen: v7x
topology: tpu7x:2x2x1
jax: 0.10.0
libtpu: 0.0.40
codegen_flags: <defaults>
</compile_context>

<pallas_src>
import numpy as np
import jax
import jax.numpy as jnp
from jax.experimental import pallas as pl
from jax.experimental.pallas import tpu as pltpu


def get_sinusoid_encoding_table(n_position, d_hid, padding_idx=None):
    """Numpy replica of the PyTorch helper (exact same math)."""
    exponents = np.array([2 * (i // 2) / d_hid for i in range(d_hid)])
    pow_table = np.power(10000, exponents)
    sinusoid_table = np.array([pos / pow_table for pos in range(n_position)])
    sinusoid_table[:, 0::2] = np.sin(sinusoid_table[:, 0::2])
    sinusoid_table[:, 1::2] = np.cos(sinusoid_table[:, 1::2])
    if padding_idx is not None:
        sinusoid_table[padding_idx] = 0.0
    return sinusoid_table.astype(np.float32)


def embedding_kernel(ids_ref, wtab_hbm, ptab_ref, out_ref, rows_vmem, copy_sems):
    # ids_ref   : SMEM (B*S,) int32          -- scalar-prefetched token ids
    # wtab_hbm  : HBM  (V, D) float32        -- word table, never enters VMEM wholesale
    # ptab_ref  : VMEM (T, D) float32        -- positional rows for this chunk
    # out_ref   : VMEM (1, T, D) float32     -- output block
    # rows_vmem : VMEM (T, D) float32        -- gathered word rows (scratch)
    # copy_sems : DMA semaphores (T,)
    b = pl.program_id(0)
    j = pl.program_id(1)
    n_chunks = pl.num_programs(1)
    T = rows_vmem.shape[0]
    base = (b * n_chunks + j) * T  # flat index of the first token in this chunk

    # Issue one row-gather DMA per token of the chunk (HBM -> VMEM).  T is a
    # small static constant, so this unrolls and keeps all T copies in flight.
    for i in range(T):
        tok = ids_ref[base + i]
        pltpu.make_async_copy(
            wtab_hbm.at[pl.ds(tok, 1), :],
            rows_vmem.at[pl.ds(i, 1), :],
            copy_sems.at[i],
        ).start()

    # Wait for all row copies to land.
    for i in range(T):
        pltpu.make_async_copy(
            wtab_hbm.at[pl.ds(0, 1), :],
            rows_vmem.at[pl.ds(i, 1), :],
            copy_sems.at[i],
        ).wait()

    # Single lane-dense VPU add + store.
    out_ref[0] = rows_vmem[...] + ptab_ref[...]


def _pick_token_chunk(seq_len, cap=128):
    """Largest 'nice' chunk size (<=cap, multiple of 8) that divides seq_len."""
    for t in (cap, 64, 32, 16, 8):
        if t <= seq_len and seq_len % t == 0:
            return t
    return seq_len  # short/odd sequences: one chunk (block == full dim is legal)


def embedding_forward(input_ids, word_table, pos_table_full, *, max_tokens_per_step=128):
    """input_ids: (B, S) int; word_table: (V, D) f32; pos_table_full: (L, D) f32."""
    B, S = input_ids.shape
    V, D = word_table.shape
    T = _pick_token_chunk(S, max_tokens_per_step)
    n_chunks = S // T

    # pos_ids = arange(S) in the PyTorch forward -> just the first S rows.
    pos_slice = pos_table_full[:S]                 # (S, D)
    ids_flat = input_ids.reshape(-1).astype(jnp.int32)  # (B*S,) -> SMEM via prefetch

    return pl.pallas_call(
        embedding_kernel,
        out_shape=jax.ShapeDtypeStruct((B, S, D), jnp.float32),
        grid_spec=pltpu.PrefetchScalarGridSpec(
            num_scalar_prefetch=1,
            grid=(B, n_chunks),
            in_specs=[
                pl.BlockSpec(memory_space=pl.ANY),                 # word table stays in HBM
                pl.BlockSpec((T, D), lambda b, j, ids: (j, 0)),    # pos rows for chunk j
            ],
            out_specs=pl.BlockSpec((1, T, D), lambda b, j, ids: (b, j, 0)),
            scratch_shapes=[
                pltpu.VMEM((T, D), jnp.float32),        # gathered word rows
                pltpu.SemaphoreType.DMA((T,)),          # one sem per in-flight row copy
            ],
        ),
        compiler_params=pltpu.CompilerParams(
            dimension_semantics=("parallel", "parallel"),
        ),
    )(ids_flat, word_table, pos_slice)


if __name__ == "__main__":
    # Small, deterministic setup consistent with the module's __init__/forward.
    # d_model chosen as a multiple of 128 so output stores are lane-dense.
    n_vocab, d_model, max_seq_len = 64, 128, 16
    batch, seq = 2, 8

    key = jax.random.PRNGKey(0)
    k_w, k_ids = jax.random.split(key)

    # nn.Embedding default init ~ N(0, 1)
    word_table = jax.random.normal(k_w, (n_vocab, d_model), dtype=jnp.float32)
    pos_table = jnp.asarray(get_sinusoid_encoding_table(max_seq_len, d_model))

    input_ids = jax.random.randint(k_ids, (batch, seq), 0, n_vocab, dtype=jnp.int32)

    out = embedding_forward(input_ids, word_table, pos_table)
    out = jax.block_until_ready(out)

    # Pure-JAX reference (same semantics as the PyTorch forward).
    # TODO(synk): like nn.Embedding, ids are assumed in-range; no OOB check in-kernel.
    ref = jnp.take(word_table, input_ids, axis=0) + pos_table[:seq][None, :, :]
    assert out.shape == (batch, seq, d_model)
    assert out.dtype == jnp.float32
    np.testing.assert_allclose(np.asarray(out), np.asarray(ref), rtol=1e-6, atol=1e-6)

    print("KERNEL_OK")
</pallas_src>

<mosaic_0001>
module attributes {stable_mosaic.version = 11 : i64} {
  func.func @embedding_kernel(%arg0: i32, %arg1: i32, %arg2: memref<16xi32, #tpu.memory_space<smem>>, %arg3: memref<64x128xf32, #tpu.memory_space<any>>, %arg4: memref<8x128xf32, #tpu.memory_space<vmem>>, %arg5: memref<1x8x128xf32, #tpu.memory_space<vmem>>, %arg6: memref<8x128xf32, #tpu.memory_space<vmem>>, %arg7: memref<8x!tpu.dma_semaphore, #tpu.memory_space<semaphore_mem>>) attributes {dimension_semantics = [#tpu.dimension_semantics<parallel>, #tpu.dimension_semantics<parallel>], iteration_bounds = array<i64: 2, 1>, scalar_prefetch = 1 : i64, scratch_operands = 2 : i64, tpu.core_type = #tpu.core_type<tc>, window_params = [{}, {transform_indices = @transform_1, window_bounds = array<i64: 8, 128>}, {transform_indices = @transform_2, window_bounds = array<i64: 1, 8, 128>}]} {
    %c1_i32 = arith.constant 1 : i32
    %0 = arith.muli %arg0, %c1_i32 : i32
    %1 = arith.addi %0, %arg1 : i32
    %c8_i32 = arith.constant 8 : i32
    %2 = arith.muli %1, %c8_i32 : i32
    %c0_i32 = arith.constant 0 : i32
    %3 = arith.addi %2, %c0_i32 : i32
    %4 = arith.index_cast %3 : i32 to index
    %5 = memref.load %arg2[%4] : memref<16xi32, #tpu.memory_space<smem>>
    %c0_i32_0 = arith.constant 0 : i32
    %c0_i32_1 = arith.constant 0 : i32
    %6 = tpu.memref_slice %arg3[%5, %c0_i32_1] : memref<64x128xf32, #tpu.memory_space<any>> -> memref<1x128xf32, #tpu.memory_space<any>>
    %c0_i32_2 = arith.constant 0 : i32
    %c0_i32_3 = arith.constant 0 : i32
    %7 = tpu.memref_slice %arg6[%c0_i32_2, %c0_i32_3] : memref<8x128xf32, #tpu.memory_space<vmem>> -> memref<1x128xf32, #tpu.memory_space<vmem>>
    %8 = tpu.memref_slice %arg7[%c0_i32_0] : memref<8x!tpu.dma_semaphore, #tpu.memory_space<semaphore_mem>> -> memref<1x!tpu.dma_semaphore, #tpu.memory_space<semaphore_mem>>
    %9 = tpu.memref_squeeze %8 : memref<1x!tpu.dma_semaphore, #tpu.memory_space<semaphore_mem>> -> memref<!tpu.dma_semaphore, #tpu.memory_space<semaphore_mem>>
    tpu.enqueue_dma source(%6 : memref<1x128xf32, #tpu.memory_space<any>>) target(%7 : memref<1x128xf32, #tpu.memory_space<vmem>>) target_semaphore(%9 : memref<!tpu.dma_semaphore, #tpu.memory_space<semaphore_mem>>)
    %c1_i32_4 = arith.constant 1 : i32
    %10 = arith.addi %2, %c1_i32_4 : i32
    %11 = arith.index_cast %10 : i32 to index
    %12 = memref.load %arg2[%11] : memref<16xi32, #tpu.memory_space<smem>>
    %c1_i32_5 = arith.constant 1 : i32
    %c0_i32_6 = arith.constant 0 : i32
    %13 = tpu.memref_slice %arg3[%12, %c0_i32_6] : memref<64x128xf32, #tpu.memory_space<any>> -> memref<1x128xf32, #tpu.memory_space<any>>
    %c1_i32_7 = arith.constant 1 : i32
    %c0_i32_8 = arith.constant 0 : i32
    %14 = tpu.memref_slice %arg6[%c1_i32_7, %c0_i32_8] : memref<8x128xf32, #tpu.memory_space<vmem>> -> memref<1x128xf32, #tpu.memory_space<vmem>>
    %15 = tpu.memref_slice %arg7[%c1_i32_5] : memref<8x!tpu.dma_semaphore, #tpu.memory_space<semaphore_mem>> -> memref<1x!tpu.dma_semaphore, #tpu.memory_space<semaphore_mem>>
    %16 = tpu.memref_squeeze %15 : memref<1x!tpu.dma_semaphore, #tpu.memory_space<semaphore_mem>> -> memref<!tpu.dma_semaphore, #tpu.memory_space<semaphore_mem>>
    tpu.enqueue_dma source(%13 : memref<1x128xf32, #tpu.memory_space<any>>) target(%14 : memref<1x128xf32, #tpu.memory_space<vmem>>) target_semaphore(%16 : memref<!tpu.dma_semaphore, #tpu.memory_space<semaphore_mem>>)
    %c2_i32 = arith.constant 2 : i32
    %17 = arith.addi %2, %c2_i32 : i32
    %18 = arith.index_cast %17 : i32 to index
    %19 = memref.load %arg2[%18] : memref<16xi32, #tpu.memory_space<smem>>
    %c2_i32_9 = arith.constant 2 : i32
    %c0_i32_10 = arith.constant 0 : i32
    %20 = tpu.memref_slice %arg3[%19, %c0_i32_10] : memref<64x128xf32, #tpu.memory_space<any>> -> memref<1x128xf32, #tpu.memory_space<any>>
    %c2_i32_11 = arith.constant 2 : i32
    %c0_i32_12 = arith.constant 0 : i32
    %21 = tpu.memref_slice %arg6[%c2_i32_11, %c0_i32_12] : memref<8x128xf32, #tpu.memory_space<vmem>> -> memref<1x128xf32, #tpu.memory_space<vmem>>
    %22 = tpu.memref_slice %arg7[%c2_i32_9] : memref<8x!tpu.dma_semaphore, #tpu.memory_space<semaphore_mem>> -> memref<1x!tpu.dma_semaphore, #tpu.memory_space<semaphore_mem>>
    %23 = tpu.memref_squeeze %22 : memref<1x!tpu.dma_semaphore, #tpu.memory_space<semaphore_mem>> -> memref<!tpu.dma_semaphore, #tpu.memory_space<semaphore_mem>>
    tpu.enqueue_dma source(%20 : memref<1x128xf32, #tpu.memory_space<any>>) target(%21 : memref<1x128xf32, #tpu.memory_space<vmem>>) target_semaphore(%23 : memref<!tpu.dma_semaphore, #tpu.memory_space<semaphore_mem>>)
    %c3_i32 = arith.constant 3 : i32
    %24 = arith.addi %2, %c3_i32 : i32
    %25 = arith.index_cast %24 : i32 to index
    %26 = memref.load %arg2[%25] : memref<16xi32, #tpu.memory_space<smem>>
    %c3_i32_13 = arith.constant 3 : i32
    %c0_i32_14 = arith.constant 0 : i32
    %27 = tpu.memref_slice %arg3[%26, %c0_i32_14] : memref<64x128xf32, #tpu.memory_space<any>> -> memref<1x128xf32, #tpu.memory_space<any>>
    %c3_i32_15 = arith.constant 3 : i32
    %c0_i32_16 = arith.constant 0 : i32
    %28 = tpu.memref_slice %arg6[%c3_i32_15, %c0_i32_16] : memref<8x128xf32, #tpu.memory_space<vmem>> -> memref<1x128xf32, #tpu.memory_space<vmem>>
    %29 = tpu.memref_slice %arg7[%c3_i32_13] : memref<8x!tpu.dma_semaphore, #tpu.memory_space<semaphore_mem>> -> memref<1x!tpu.dma_semaphore, #tpu.memory_space<semaphore_mem>>
    %30 = tpu.memref_squeeze %29 : memref<1x!tpu.dma_semaphore, #tpu.memory_space<semaphore_mem>> -> memref<!tpu.dma_semaphore, #tpu.memory_space<semaphore_mem>>
    tpu.enqueue_dma source(%27 : memref<1x128xf32, #tpu.memory_space<any>>) target(%28 : memref<1x128xf32, #tpu.memory_space<vmem>>) target_semaphore(%30 : memref<!tpu.dma_semaphore, #tpu.memory_space<semaphore_mem>>)
    %c4_i32 = arith.constant 4 : i32
    %31 = arith.addi %2, %c4_i32 : i32
    %32 = arith.index_cast %31 : i32 to index
    %33 = memref.load %arg2[%32] : memref<16xi32, #tpu.memory_space<smem>>
    %c4_i32_17 = arith.constant 4 : i32
    %c0_i32_18 = arith.constant 0 : i32
    %34 = tpu.memref_slice %arg3[%33, %c0_i32_18] : memref<64x128xf32, #tpu.memory_space<any>> -> memref<1x128xf32, #tpu.memory_space<any>>
    %c4_i32_19 = arith.constant 4 : i32
    %c0_i32_20 = arith.constant 0 : i32
    %35 = tpu.memref_slice %arg6[%c4_i32_19, %c0_i32_20] : memref<8x128xf32, #tpu.memory_space<vmem>> -> memref<1x128xf32, #tpu.memory_space<vmem>>
    %36 = tpu.memref_slice %arg7[%c4_i32_17] : memref<8x!tpu.dma_semaphore, #tpu.memory_space<semaphore_mem>> -> memref<1x!tpu.dma_semaphore, #tpu.memory_space<semaphore_mem>>
    %37 = tpu.memref_squeeze %36 : memref<1x!tpu.dma_semaphore, #tpu.memory_space<semaphore_mem>> -> memref<!tpu.dma_semaphore, #tpu.memory_space<semaphore_mem>>
    tpu.enqueue_dma source(%34 : memref<1x128xf32, #tpu.memory_space<any>>) target(%35 : memref<1x128xf32, #tpu.memory_space<vmem>>) target_semaphore(%37 : memref<!tpu.dma_semaphore, #tpu.memory_space<semaphore_mem>>)
    %c5_i32 = arith.constant 5 : i32
    %38 = arith.addi %2, %c5_i32 : i32
    %39 = arith.index_cast %38 : i32 to index
    %40 = memref.load %arg2[%39] : memref<16xi32, #tpu.memory_space<smem>>
    %c5_i32_21 = arith.constant 5 : i32
    %c0_i32_22 = arith.constant 0 : i32
    %41 = tpu.memref_slice %arg3[%40, %c0_i32_22] : memref<64x128xf32, #tpu.memory_space<any>> -> memref<1x128xf32, #tpu.memory_space<any>>
    %c5_i32_23 = arith.constant 5 : i32
    %c0_i32_24 = arith.constant 0 : i32
    %42 = tpu.memref_slice %arg6[%c5_i32_23, %c0_i32_24] : memref<8x128xf32, #tpu.memory_space<vmem>> -> memref<1x128xf32, #tpu.memory_space<vmem>>
    %43 = tpu.memref_slice %arg7[%c5_i32_21] : memref<8x!tpu.dma_semaphore, #tpu.memory_space<semaphore_mem>> -> memref<1x!tpu.dma_semaphore, #tpu.memory_space<semaphore_mem>>
    %44 = tpu.memref_squeeze %43 : memref<1x!tpu.dma_semaphore, #tpu.memory_space<semaphore_mem>> -> memref<!tpu.dma_semaphore, #tpu.memory_space<semaphore_mem>>
    tpu.enqueue_dma source(%41 : memref<1x128xf32, #tpu.memory_space<any>>) target(%42 : memref<1x128xf32, #tpu.memory_space<vmem>>) target_semaphore(%44 : memref<!tpu.dma_semaphore, #tpu.memory_space<semaphore_mem>>)
    %c6_i32 = arith.constant 6 : i32
    %45 = arith.addi %2, %c6_i32 : i32
    %46 = arith.index_cast %45 : i32 to index
    %47 = memref.load %arg2[%46] : memref<16xi32, #tpu.memory_space<smem>>
    %c6_i32_25 = arith.constant 6 : i32
    %c0_i32_26 = arith.constant 0 : i32
    %48 = tpu.memref_slice %arg3[%47, %c0_i32_26] : memref<64x128xf32, #tpu.memory_space<any>> -> memref<1x128xf32, #tpu.memory_space<any>>
    %c6_i32_27 = arith.constant 6 : i32
    %c0_i32_28 = arith.constant 0 : i32
    %49 = tpu.memref_slice %arg6[%c6_i32_27, %c0_i32_28] : memref<8x128xf32, #tpu.memory_space<vmem>> -> memref<1x128xf32, #tpu.memory_space<vmem>>
    %50 = tpu.memref_slice %arg7[%c6_i32_25] : memref<8x!tpu.dma_semaphore, #tpu.memory_space<semaphore_mem>> -> memref<1x!tpu.dma_semaphore, #tpu.memory_space<semaphore_mem>>
    %51 = tpu.memref_squeeze %50 : memref<1x!tpu.dma_semaphore, #tpu.memory_space<semaphore_mem>> -> memref<!tpu.dma_semaphore, #tpu.memory_space<semaphore_mem>>
    tpu.enqueue_dma source(%48 : memref<1x128xf32, #tpu.memory_space<any>>) target(%49 : memref<1x128xf32, #tpu.memory_space<vmem>>) target_semaphore(%51 : memref<!tpu.dma_semaphore, #tpu.memory_space<semaphore_mem>>)
    %c7_i32 = arith.constant 7 : i32
    %52 = arith.addi %2, %c7_i32 : i32
    %53 = arith.index_cast %52 : i32 to index
    %54 = memref.load %arg2[%53] : memref<16xi32, #tpu.memory_space<smem>>
    %c7_i32_29 = arith.constant 7 : i32
    %c0_i32_30 = arith.constant 0 : i32
    %55 = tpu.memref_slice %arg3[%54, %c0_i32_30] : memref<64x128xf32, #tpu.memory_space<any>> -> memref<1x128xf32, #tpu.memory_space<any>>
    %c7_i32_31 = arith.constant 7 : i32
    %c0_i32_32 = arith.constant 0 : i32
    %56 = tpu.memref_slice %arg6[%c7_i32_31, %c0_i32_32] : memref<8x128xf32, #tpu.memory_space<vmem>> -> memref<1x128xf32, #tpu.memory_space<vmem>>
    %57 = tpu.memref_slice %arg7[%c7_i32_29] : memref<8x!tpu.dma_semaphore, #tpu.memory_space<semaphore_mem>> -> memref<1x!tpu.dma_semaphore, #tpu.memory_space<semaphore_mem>>
    %58 = tpu.memref_squeeze %57 : memref<1x!tpu.dma_semaphore, #tpu.memory_space<semaphore_mem>> -> memref<!tpu.dma_semaphore, #tpu.memory_space<semaphore_mem>>
    tpu.enqueue_dma source(%55 : memref<1x128xf32, #tpu.memory_space<any>>) target(%56 : memref<1x128xf32, #tpu.memory_space<vmem>>) target_semaphore(%58 : memref<!tpu.dma_semaphore, #tpu.memory_space<semaphore_mem>>)
    %c0_i32_33 = arith.constant 0 : i32
    %c0_i32_34 = arith.constant 0 : i32
    %c0_i32_35 = arith.constant 0 : i32
    %59 = tpu.memref_slice %arg3[%c0_i32_34, %c0_i32_35] : memref<64x128xf32, #tpu.memory_space<any>> -> memref<1x128xf32, #tpu.memory_space<any>>
    %c0_i32_36 = arith.constant 0 : i32
    %c0_i32_37 = arith.constant 0 : i32
    %60 = tpu.memref_slice %arg6[%c0_i32_36, %c0_i32_37] : memref<8x128xf32, #tpu.memory_space<vmem>> -> memref<1x128xf32, #tpu.memory_space<vmem>>
    %61 = tpu.memref_slice %arg7[%c0_i32_33] : memref<8x!tpu.dma_semaphore, #tpu.memory_space<semaphore_mem>> -> memref<1x!tpu.dma_semaphore, #tpu.memory_space<semaphore_mem>>
    %62 = tpu.memref_squeeze %61 : memref<1x!tpu.dma_semaphore, #tpu.memory_space<semaphore_mem>> -> memref<!tpu.dma_semaphore, #tpu.memory_space<semaphore_mem>>
    tpu.wait_dma2 semaphore(%62 : memref<!tpu.dma_semaphore, #tpu.memory_space<semaphore_mem>>) src(%59 : memref<1x128xf32, #tpu.memory_space<any>>) dst(%60 : memref<1x128xf32, #tpu.memory_space<vmem>>)
    %c1_i32_38 = arith.constant 1 : i32
    %c0_i32_39 = arith.constant 0 : i32
    %c0_i32_40 = arith.constant 0 : i32
    %63 = tpu.memref_slice %arg3[%c0_i32_39, %c0_i32_40] : memref<64x128xf32, #tpu.memory_space<any>> -> memref<1x128xf32, #tpu.memory_space<any>>
    %c1_i32_41 = arith.constant 1 : i32
    %c0_i32_42 = arith.constant 0 : i32
    %64 = tpu.memref_slice %arg6[%c1_i32_41, %c0_i32_42] : memref<8x128xf32, #tpu.memory_space<vmem>> -> memref<1x128xf32, #tpu.memory_space<vmem>>
    %65 = tpu.memref_slice %arg7[%c1_i32_38] : memref<8x!tpu.dma_semaphore, #tpu.memory_space<semaphore_mem>> -> memref<1x!tpu.dma_semaphore, #tpu.memory_space<semaphore_mem>>
    %66 = tpu.memref_squeeze %65 : memref<1x!tpu.dma_semaphore, #tpu.memory_space<semaphore_mem>> -> memref<!tpu.dma_semaphore, #tpu.memory_space<semaphore_mem>>
    tpu.wait_dma2 semaphore(%66 : memref<!tpu.dma_semaphore, #tpu.memory_space<semaphore_mem>>) src(%63 : memref<1x128xf32, #tpu.memory_space<any>>) dst(%64 : memref<1x128xf32, #tpu.memory_space<vmem>>)
    %c2_i32_43 = arith.constant 2 : i32
    %c0_i32_44 = arith.constant 0 : i32
    %c0_i32_45 = arith.constant 0 : i32
    %67 = tpu.memref_slice %arg3[%c0_i32_44, %c0_i32_45] : memref<64x128xf32, #tpu.memory_space<any>> -> memref<1x128xf32, #tpu.memory_space<any>>
    %c2_i32_46 = arith.constant 2 : i32
    %c0_i32_47 = arith.constant 0 : i32
    %68 = tpu.memref_slice %arg6[%c2_i32_46, %c0_i32_47] : memref<8x128xf32, #tpu.memory_space<vmem>> -> memref<1x128xf32, #tpu.memory_space<vmem>>
    %69 = tpu.memref_slice %arg7[%c2_i32_43] : memref<8x!tpu.dma_semaphore, #tpu.memory_space<semaphore_mem>> -> memref<1x!tpu.dma_semaphore, #tpu.memory_space<semaphore_mem>>
    %70 = tpu.memref_squeeze %69 : memref<1x!tpu.dma_semaphore, #tpu.memory_space<semaphore_mem>> -> memref<!tpu.dma_semaphore, #tpu.memory_space<semaphore_mem>>
    tpu.wait_dma2 semaphore(%70 : memref<!tpu.dma_semaphore, #tpu.memory_space<semaphore_mem>>) src(%67 : memref<1x128xf32, #tpu.memory_space<any>>) dst(%68 : memref<1x128xf32, #tpu.memory_space<vmem>>)
    %c3_i32_48 = arith.constant 3 : i32
    %c0_i32_49 = arith.constant 0 : i32
    %c0_i32_50 = arith.constant 0 : i32
    %71 = tpu.memref_slice %arg3[%c0_i32_49, %c0_i32_50] : memref<64x128xf32, #tpu.memory_space<any>> -> memref<1x128xf32, #tpu.memory_space<any>>
    %c3_i32_51 = arith.constant 3 : i32
    %c0_i32_52 = arith.constant 0 : i32
    %72 = tpu.memref_slice %arg6[%c3_i32_51, %c0_i32_52] : memref<8x128xf32, #tpu.memory_space<vmem>> -> memref<1x128xf32, #tpu.memory_space<vmem>>
    %73 = tpu.memref_slice %arg7[%c3_i32_48] : memref<8x!tpu.dma_semaphore, #tpu.memory_space<semaphore_mem>> -> memref<1x!tpu.dma_semaphore, #tpu.memory_space<semaphore_mem>>
    %74 = tpu.memref_squeeze %73 : memref<1x!tpu.dma_semaphore, #tpu.memory_space<semaphore_mem>> -> memref<!tpu.dma_semaphore, #tpu.memory_space<semaphore_mem>>
    tpu.wait_dma2 semaphore(%74 : memref<!tpu.dma_semaphore, #tpu.memory_space<semaphore_mem>>) src(%71 : memref<1x128xf32, #tpu.memory_space<any>>) dst(%72 : memref<1x128xf32, #tpu.memory_space<vmem>>)
    %c4_i32_53 = arith.constant 4 : i32
    %c0_i32_54 = arith.constant 0 : i32
    %c0_i32_55 = arith.constant 0 : i32
    %75 = tpu.memref_slice %arg3[%c0_i32_54, %c0_i32_55] : memref<64x128xf32, #tpu.memory_space<any>> -> memref<1x128xf32, #tpu.memory_space<any>>
    %c4_i32_56 = arith.constant 4 : i32
    %c0_i32_57 = arith.constant 0 : i32
    %76 = tpu.memref_slice %arg6[%c4_i32_56, %c0_i32_57] : memref<8x128xf32, #tpu.memory_space<vmem>> -> memref<1x128xf32, #tpu.memory_space<vmem>>
    %77 = tpu.memref_slice %arg7[%c4_i32_53] : memref<8x!tpu.dma_semaphore, #tpu.memory_space<semaphore_mem>> -> memref<1x!tpu.dma_semaphore, #tpu.memory_space<semaphore_mem>>
    %78 = tpu.memref_squeeze %77 : memref<1x!tpu.dma_semaphore, #tpu.memory_space<semaphore_mem>> -> memref<!tpu.dma_semaphore, #tpu.memory_space<semaphore_mem>>
    tpu.wait_dma2 semaphore(%78 : memref<!tpu.dma_semaphore, #tpu.memory_space<semaphore_mem>>) src(%75 : memref<1x128xf32, #tpu.memory_space<any>>) dst(%76 : memref<1x128xf32, #tpu.memory_space<vmem>>)
    %c5_i32_58 = arith.constant 5 : i32
    %c0_i32_59 = arith.constant 0 : i32
    %c0_i32_60 = arith.constant 0 : i32
    %79 = tpu.memref_slice %arg3[%c0_i32_59, %c0_i32_60] : memref<64x128xf32, #tpu.memory_space<any>> -> memref<1x128xf32, #tpu.memory_space<any>>
    %c5_i32_61 = arith.constant 5 : i32
    %c0_i32_62 = arith.constant 0 : i32
    %80 = tpu.memref_slice %arg6[%c5_i32_61, %c0_i32_62] : memref<8x128xf32, #tpu.memory_space<vmem>> -> memref<1x128xf32, #tpu.memory_space<vmem>>
    %81 = tpu.memref_slice %arg7[%c5_i32_58] : memref<8x!tpu.dma_semaphore, #tpu.memory_space<semaphore_mem>> -> memref<1x!tpu.dma_semaphore, #tpu.memory_space<semaphore_mem>>
    %82 = tpu.memref_squeeze %81 : memref<1x!tpu.dma_semaphore, #tpu.memory_space<semaphore_mem>> -> memref<!tpu.dma_semaphore, #tpu.memory_space<semaphore_mem>>
    tpu.wait_dma2 semaphore(%82 : memref<!tpu.dma_semaphore, #tpu.memory_space<semaphore_mem>>) src(%79 : memref<1x128xf32, #tpu.memory_space<any>>) dst(%80 : memref<1x128xf32, #tpu.memory_space<vmem>>)
    %c6_i32_63 = arith.constant 6 : i32
    %c0_i32_64 = arith.constant 0 : i32
    %c0_i32_65 = arith.constant 0 : i32
    %83 = tpu.memref_slice %arg3[%c0_i32_64, %c0_i32_65] : memref<64x128xf32, #tpu.memory_space<any>> -> memref<1x128xf32, #tpu.memory_space<any>>
    %c6_i32_66 = arith.constant 6 : i32
    %c0_i32_67 = arith.constant 0 : i32
    %84 = tpu.memref_slice %arg6[%c6_i32_66, %c0_i32_67] : memref<8x128xf32, #tpu.memory_space<vmem>> -> memref<1x128xf32, #tpu.memory_space<vmem>>
    %85 = tpu.memref_slice %arg7[%c6_i32_63] : memref<8x!tpu.dma_semaphore, #tpu.memory_space<semaphore_mem>> -> memref<1x!tpu.dma_semaphore, #tpu.memory_space<semaphore_mem>>
    %86 = tpu.memref_squeeze %85 : memref<1x!tpu.dma_semaphore, #tpu.memory_space<semaphore_mem>> -> memref<!tpu.dma_semaphore, #tpu.memory_space<semaphore_mem>>
    tpu.wait_dma2 semaphore(%86 : memref<!tpu.dma_semaphore, #tpu.memory_space<semaphore_mem>>) src(%83 : memref<1x128xf32, #tpu.memory_space<any>>) dst(%84 : memref<1x128xf32, #tpu.memory_space<vmem>>)
    %c7_i32_68 = arith.constant 7 : i32
    %c0_i32_69 = arith.constant 0 : i32
    %c0_i32_70 = arith.constant 0 : i32
    %87 = tpu.memref_slice %arg3[%c0_i32_69, %c0_i32_70] : memref<64x128xf32, #tpu.memory_space<any>> -> memref<1x128xf32, #tpu.memory_space<any>>
    %c7_i32_71 = arith.constant 7 : i32
    %c0_i32_72 = arith.constant 0 : i32
    %88 = tpu.memref_slice %arg6[%c7_i32_71, %c0_i32_72] : memref<8x128xf32, #tpu.memory_space<vmem>> -> memref<1x128xf32, #tpu.memory_space<vmem>>
    %89 = tpu.memref_slice %arg7[%c7_i32_68] : memref<8x!tpu.dma_semaphore, #tpu.memory_space<semaphore_mem>> -> memref<1x!tpu.dma_semaphore, #tpu.memory_space<semaphore_mem>>
    %90 = tpu.memref_squeeze %89 : memref<1x!tpu.dma_semaphore, #tpu.memory_space<semaphore_mem>> -> memref<!tpu.dma_semaphore, #tpu.memory_space<semaphore_mem>>
    tpu.wait_dma2 semaphore(%90 : memref<!tpu.dma_semaphore, #tpu.memory_space<semaphore_mem>>) src(%87 : memref<1x128xf32, #tpu.memory_space<any>>) dst(%88 : memref<1x128xf32, #tpu.memory_space<vmem>>)
    %c0 = arith.constant 0 : index
    %c0_73 = arith.constant 0 : index
    %91 = vector.load %arg6[%c0, %c0_73] : memref<8x128xf32, #tpu.memory_space<vmem>>, vector<8x128xf32>
    %c0_74 = arith.constant 0 : index
    %c0_75 = arith.constant 0 : index
    %92 = vector.load %arg4[%c0_74, %c0_75] : memref<8x128xf32, #tpu.memory_space<vmem>>, vector<8x128xf32>
    %93 = arith.addf %91, %92 : vector<8x128xf32>
    %c0_76 = arith.constant 0 : index
    %c0_77 = arith.constant 0 : index
    %c0_78 = arith.constant 0 : index
    %94 = vector.load %arg5[%c0_76, %c0_77, %c0_78] : memref<1x8x128xf32, #tpu.memory_space<vmem>>, vector<1x8x128xf32>
    %95 = vector.shape_cast %94 : vector<1x8x128xf32> to vector<8x128xf32>
    %96 = vector.shape_cast %93 : vector<8x128xf32> to vector<1x8x128xf32>
    tpu.vector_store %arg5[%c0_76, %c0_77, %c0_78], %96 {strides = array<i32>} : memref<1x8x128xf32, #tpu.memory_space<vmem>>, vector<1x8x128xf32>,
    return
  }
  func.func @transform_1(%arg0: i32, %arg1: i32, %arg2: memref<16xi32, #tpu.memory_space<smem>>) -> (i32, i32) {
    %c0_i32 = arith.constant 0 : i32
    %c0_i32_0 = arith.constant 0 : i32
    return %arg1, %c0_i32 : i32, i32
  }
  func.func @transform_2(%arg0: i32, %arg1: i32, %arg2: memref<16xi32, #tpu.memory_space<smem>>) -> (i32, i32, i32) {
    %c0_i32 = arith.constant 0 : i32
    %c0_i32_0 = arith.constant 0 : i32
    return %arg0, %arg1, %c0_i32 : i32, i32, i32
  }
}

</mosaic_0001>

<bundles_post_ra>
// kernel: tpu_custom_call.1
= control target key start
LH: loop header
LB: loop body
LE: loop exit
PB: predicated region body
PF: predicated region fallthrough
CT: control target
= control target key end

     0   :  { %s1204_s0 = inlined_call_operand.hbm [shape: s32[16], index: 0, kind: input, shape index: {}]   ;;  %s1205_s1 = inlined_call_operand.hbm [shape: f32[64,128], index: 1, kind: input, shape index: {}]   ;;  %s1206_s2 = inlined_call_operand.hbm [shape: f32[8,128], index: 2, kind: input, shape index: {}]   ;;  %s1207_s3 = inlined_call_operand.hbm [shape: f32[2,8,128], index: 3, kind: output, shape index: {}]  }
   0x1   :  { %1215 = sst [smem:[#allocation41_spill]] %s1206_s2  ;;  %s550_s14 = scalar_lea.hbm %s1204_s0, 16 }
   0x2   :  { %p551_p0 = scmp.ne.s32.totalorder %s1204_s0, %s550_s14  ;;  %p554_p1 = scmp.lt.u32.totalorder %s550_s14, %s1204_s0 }
   0x4   :  { %p556_p2 = pnand %p554_p1, %p551_p0 }
   0x6   :  { %559 = shalt.err (!%p556_p2)  }
   0x7   :  { %s882_s19 = smov [#allocation5]  }
   0x8   :  { %9 = dma.hbm_to_smem %s1204_s0, 16, %s882_s19, [#allocation4] }
   0x9   :  { %832 = dma.done.wait [#allocation4], 16 }
   0xa   :  { %833 = vsyncadd [#allocation4], 4294967280 }
   0xb   :  { %11 = sfence }
   0xc   :  { %12 = vsyncpa [#allocation7], 0 }
   0xd   :  { %13 = vsyncpa [#allocation8], 0 }
   0xe   :  { %15 = vsyncpa [#allocation8 + $0x1], 0  ;;  %s925_s22 = smov 0   ;;  %s927_s23 = smov 0  }
   0xf   :  { %s929_s24 = smov 0   ;;  %s931_s25 = smov 0  }
  0x10   :  { %s933_s26 = smov 0   ;;  %s935_s27 = smov 0  }
  0x11 LB: > { %1216 = sst [smem:[#allocation39_spill]] %s876_s26  ;;  %s447_s0 = sadd.s32 4294967295, %s880_s27   ;;  %s880_s27 = sphi %s935_s27, %s21_s27   ;;  %s876_s26 = sphi %s933_s26, %s1230_s26   ;;  %s872_s25 = sphi %s931_s25, %s1229_s25   ;;  %s868_s24 = sphi %s929_s24, %s1233_s24   ;;  %s864_s23 = sphi %s927_s23, %s1232_s23   ;;  %s860_s22 = sphi %s925_s22, %s1231_s22  }
  0x12   : > { %s448_s28 = sadd.s32 4294967294, %s880_s27   ;;  %s33_s29 = sadd.s32 1, %s876_s26 }
  0x13   : > { %s68_s30 = sadd.s32 1, %s868_s24  ;;  %p35_p3 = scmp.ge.s32.totalorder %s33_s29, 2 }
  0x14   : > { %p78_p4 = scmp.ne.s32.totalorder %s868_s24, %s864_s23  ;;  %p79_p5 = scmp.eq.s32.totalorder %s447_s0, 1 }
  0x15   : > { %p84_p6 = scmp.ne.s32.totalorder %s864_s23, %s860_s22  ;;  %s1235_s29 = smov (%p35_p3, %s33_s29), 0 }
  0x16   : > { %1217 = sst [smem:[#allocation40_spill]] %s1235_s29  ;;  %p965_p7 = por %p79_p5, %p78_p4 }
  0x17   : > { %p85_p8 = scmp.eq.s32.totalorder %s448_s28, 1  ;;  %s63_s5 = ssub.s32 %s876_s26, %s1235_s29 }
  0x18   : > { %s1218_s4 = scalar_select %p965_p7, 1, 0 }
  0x19   : > { %p449_p9 = scmp.ge.s32.totalorder %s880_s27, 1  ;;  %p66_p10 = scmp.eq.s32.totalorder %s63_s5, 0 }
  0x1a   : > { %p972_p11 = por %p85_p8, %p84_p6  ;;  %p92_p12 = scmp.lt.s32.totalorder %s880_s27, 3 }
  0x1b   : > { %s978_s7 = scalar_select %p66_p10, %s868_s24, %s68_s30  }
  0x1c   : > { %s1219_s6 = scalar_select %p972_p11, 1, 0 }
  0x1d   : > { %p980_p13 = pnand %p449_p9, %p92_p12  ;;  %p984_p0 = scmp.eq.s32.totalorder %s447_s0, 0 }
  0x1e   : > { %s883_s10 = smov [#allocation6]   ;;  %s1223_s2 = sld [smem:[#allocation41_spill]] }
  0x1f   : > { %s1220_s8 = scalar_select %p980_p13, 1, 0 }
  0x20   : > { %s1221_s9 = scalar_select %p984_p0, 1, 0 }
  0x21   : > { %p481_p1 = pneg %p980_p13  ;;  %s107_s11 = sshll.u32 %s883_s10, 4  ;;  %s108_s11 = int_to_ptr.vmem [resolvable:$true] %s107_s11 }
  0x23   : > { %p992_p2 = pnand %p984_p0, %p481_p1 }
  0x24   : > { %s560_s15 = scalar_lea.hbm %s1223_s2, 128 }
  0x25   : > { %p561_p3 = scmp.ne.s32.totalorder %s1223_s2, %s560_s15  ;;  %p562_p4 = pneg %p992_p2 }
  0x26   : > { %p567_p8 = scmp.lt.u32.totalorder %s560_s15, %s1223_s2 }
  0x27   : > { %p563_p5 = pnand %p562_p4, %p561_p3 }
  0x29   : > { %p564_p6 = pneg %p563_p5 }
  0x2b   : > { %p569_p9 = pnand %p567_p8, %p564_p6 }
  0x2d   : > { %572 = shalt.err (!%p569_p9)
}
  0x2e   : > { %s573_s20 = scalar_lea.vmem %s108_s11, 128  ;;  %p581_p11 = scmp.lt.s32.totalorder %s108_s11, %s108_s11 }
  0x2f   : > { %p574_p10 = scmp.ne.s32.totalorder %s108_s11, %s573_s20  ;;  %p582_p7 = scmp.lt.s32.totalorder %s573_s20, %s573_s20 }
  0x31   : > { %p576_p12 = pnand %p574_p10, %p562_p4  ;;  %p583_p0 = por %p582_p7, %p581_p11 }
  0x33   : > { %p577_p1 = pneg %p576_p12 }
  0x35   : > { %p584_p13 = pnand %p583_p0, %p577_p1 }
  0x37   : > { %587 = shalt.err (!%p584_p13)
}
  0x38   : > { %484 = dma.hbm_to_vmem [thread:$0]  (!%p992_p2), %s1223_s2, 128, %s108_s11, [#allocation7]  }
  0x39   : > { %p1224_p3 = scmp.ne.s32.totalorder %s1220_s8, 0 }
  0x3a   : > { %p1225_p5 = scmp.ne.s32.totalorder (!%p1224_p3), %s1221_s9, 0 }
  0x3b   : > { %120 = sbr.rel (%p1224_p3) target bundleno = 290 (0x122), region = 24 }
  0x42   : > { %835 = dma.done.wait (%p1225_p5), [#allocation7], 128  }
  0x43   : > { %837 = vsyncadd (%p1225_p5), [#allocation7], 4294967168  ;;  %s1212_s28 = sand.u32 1, %s864_s23   ;;  %s1020_s30 = sshll.u32 %s872_s25, 3 }
  0x44   : > { %s1024_s5 = sshll.u32 %s1212_s28, 3  ;;  %s137_s8 = sld [smem:[#allocation5 + %s1020_s30]] }
  0x45   : > { %s884_s10 = smov [#allocation2]   ;;  %s151_s12 = sadd.s32 1, %s1020_s30 }
  0x46   : > { %s147_s11 = sshll.u32 %s884_s10, 4  ;;  %s1030_s9 = sld [smem:[#allocation5 + %s151_s12]]  ;;  %s1028_s11 = int_to_ptr.vmem [resolvable:$true] %s147_s11 }
  0x47   : > { %s168_s13 = sadd.s32 2, %s1020_s30  ;;  %s885_s14 = smov [#allocation2 + $0x1]  }
  0x48   : > { %s164_s15 = sshll.u32 %s885_s14, 4  ;;  %s1033_s16 = sld [smem:[#allocation5 + %s168_s13]]  ;;  %s1035_s15 = int_to_ptr.vmem [resolvable:$true] %s164_s15 }
  0x49   : > { %s1043_s28 = scalar_lea.hbm %s1205_s1, 1024 }
  0x4a   : > { %s455_s17 = sshll.u32 %s137_s8, 4 }
  0x4b   : > { %s139_s20 = scalar_lea.hbm %s1205_s1, %s455_s17 }
  0x4c   : > { %s588_s21 = scalar_lea.hbm %s139_s20, 16  ;;  %p591_p11 = scmp.lt.u32.totalorder %s139_s20, %s1205_s1 }
  0x4d   : > { %p589_p7 = scmp.ne.s32.totalorder %s139_s20, %s588_s21  ;;  %p592_p13 = scmp.lt.u32.totalorder %s1043_s28, %s588_s21 }
  0x4e   : > { %p594_p2 = scmp.lt.u32.totalorder %s588_s21, %s139_s20 }
  0x4f   : > { %p593_p0 = por %p592_p13, %p591_p11 }
  0x51   : > { %p595_p4 = por %p594_p2, %p593_p0 }
  0x53   : > { %p596_p6 = pnand %p595_p4, %p589_p7 }
  0x55   : > { %599 = shalt.err (!%p596_p6)  }
  0x56   : > { %s600_s8 = scalar_lea.vmem %s1028_s11, 16  ;;  %s1052_s13 = scalar_lea.vmem %s1028_s11, 128 }
  0x57   : > { %p601_p8 = scmp.ne.s32.totalorder %s1028_s11, %s600_s8  ;;  %p605_p9 = scmp.lt.s32.totalorder %s1028_s11, %s1028_s11 }
  0x58   : > { %p606_p10 = scmp.lt.s32.totalorder %s1052_s13, %s600_s8 }
  0x5a   : > { %p607_p12 = por %p606_p10, %p605_p9 }
  0x5c   : > { %p608_p1 = pnand %p607_p12, %p601_p8 }
  0x5e   : > { %611 = shalt.err (!%p608_p1)  }
  0x5f   : > { %150 = dma.hbm_to_vmem [thread:$0]  %s139_s20, 16, %s1028_s11, [#allocation3] }
  0x60   : > { %s456_s2 = sshll.u32 %s1030_s9, 4  ;;  %s886_s14 = smov [#allocation2 + $0x2]  }
  0x61   : > { %s181_s17 = sshll.u32 %s886_s14, 4  ;;  %s154_s21 = scalar_lea.hbm %s1205_s1, %s456_s2  ;;  %s1062_s17 = int_to_ptr.vmem [resolvable:$true] %s181_s17 }
  0x62   : > { %s612_s0 = scalar_lea.hbm %s154_s21, 16  ;;  %p615_p5 = scmp.lt.u32.totalorder %s154_s21, %s1205_s1 }
  0x63   : > { %p613_p3 = scmp.ne.s32.totalorder %s154_s21, %s612_s0  ;;  %p616_p7 = scmp.lt.u32.totalorder %s1043_s28, %s612_s0 }
  0x64   : > { %p618_p13 = scmp.lt.u32.totalorder %s612_s0, %s154_s21 }
  0x65   : > { %p617_p11 = por %p616_p7, %p615_p5 }
  0x67   : > { %p619_p0 = por %p618_p13, %p617_p11 }
  0x69   : > { %p620_p2 = pnand %p619_p0, %p613_p3 }
  0x6b   : > { %623 = shalt.err (!%p620_p2)  }
  0x6c   : > { %s624_s9 = scalar_lea.vmem %s1035_s15, 16  ;;  %p629_p6 = scmp.lt.s32.totalorder %s1035_s15, %s1028_s11 }
  0x6d   : > { %p625_p4 = scmp.ne.s32.totalorder %s1035_s15, %s624_s9  ;;  %p630_p8 = scmp.lt.s32.totalorder %s1052_s13, %s624_s9 }
  0x6f   : > { %p631_p9 = por %p630_p8, %p629_p6 }
  0x71   : > { %p632_p10 = pnand %p631_p9, %p625_p4 }
  0x73   : > { %635 = shalt.err (!%p632_p10)  }
  0x74   : > { %167 = dma.hbm_to_vmem [thread:$0]  %s154_s21, 16, %s1035_s15, [#allocation3 + $0x1] }
  0x75   : > { %s457_s20 = sshll.u32 %s1033_s16, 4  ;;  %s185_s8 = sadd.s32 3, %s1020_s30 }
  0x76   : > { %s171_s18 = scalar_lea.hbm %s1205_s1, %s457_s20  ;;  %s1079_s19 = sld [smem:[#allocation5 + %s185_s8]] }
  0x77   : > { %s636_s0 = scalar_lea.hbm %s171_s18, 16  ;;  %p639_p1 = scmp.lt.u32.totalorder %s171_s18, %s1205_s1 }
  0x78   : > { %p637_p12 = scmp.ne.s32.totalorder %s171_s18, %s636_s0  ;;  %p640_p3 = scmp.lt.u32.totalorder %s1043_s28, %s636_s0 }
  0x79   : > { %p642_p7 = scmp.lt.u32.totalorder %s636_s0, %s171_s18 }
  0x7a   : > { %p641_p5 = por %p640_p3, %p639_p1 }
  0x7c   : > { %p643_p11 = por %p642_p7, %p641_p5 }
  0x7e   : > { %p644_p13 = pnand %p643_p11, %p637_p12 }
  0x80   : > { %647 = shalt.err (!%p644_p13)  }
  0x81   : > { %s648_s15 = scalar_lea.vmem %s1062_s17, 16  ;;  %p653_p2 = scmp.lt.s32.totalorder %s1062_s17, %s1028_s11 }
  0x82   : > { %p649_p0 = scmp.ne.s32.totalorder %s1062_s17, %s648_s15  ;;  %p654_p4 = scmp.lt.s32.totalorder %s1052_s13, %s648_s15 }
  0x84   : > { %p655_p6 = por %p654_p4, %p653_p2 }
  0x86   : > { %p656_p8 = pnand %p655_p6, %p649_p0 }
  0x88   : > { %659 = shalt.err (!%p656_p8)  }
  0x89   : > { %184 = dma.hbm_to_vmem [thread:$0]  %s171_s18, 16, %s1062_s17, [#allocation3 + $0x2] }
  0x8a   : > { %s202_s16 = sadd.s32 4, %s1020_s30  ;;  %s887_s21 = smov [#allocation2 + $0x3]  }
  0x8b   : > { %s198_s9 = sshll.u32 %s887_s21, 4  ;;  %s203_s20 = sld [smem:[#allocation5 + %s202_s16]]  ;;  %s199_s9 = int_to_ptr.vmem [resolvable:$true] %s198_s9 }
  0x8c   : > { %s888_s8 = smov [#allocation2 + $0x4]   ;;  %s219_s14 = sadd.s32 5, %s1020_s30 }
  0x8d   : > { %s215_s2 = sshll.u32 %s888_s8, 4  ;;  %s458_s0 = sshll.u32 %s1079_s19, 4  ;;  %s1094_s2 = int_to_ptr.vmem [resolvable:$true] %s215_s2 }
  0x8e   : > { %s188_s15 = scalar_lea.hbm %s1205_s1, %s458_s0  ;;  %s1099_s29 = sld [smem:[#allocation5 + %s219_s14]] }
  0x8f   : > { %s660_s26 = scalar_lea.hbm %s188_s15, 16  ;;  %p663_p10 = scmp.lt.u32.totalorder %s188_s15, %s1205_s1 }
  0x90   : > { %p661_p9 = scmp.ne.s32.totalorder %s188_s15, %s660_s26  ;;  %p664_p12 = scmp.lt.u32.totalorder %s1043_s28, %s660_s26 }
  0x91   : > { %p666_p3 = scmp.lt.u32.totalorder %s660_s26, %s188_s15 }
  0x92   : > { %p665_p1 = por %p664_p12, %p663_p10 }
  0x94   : > { %p667_p5 = por %p666_p3, %p665_p1 }
  0x96   : > { %p668_p7 = pnand %p667_p5, %p661_p9 }
  0x98   : > { %671 = shalt.err (!%p668_p7)  }
  0x99   : > { %s672_s19 = scalar_lea.vmem %s199_s9, 16  ;;  %p677_p13 = scmp.lt.s32.totalorder %s199_s9, %s1028_s11 }
  0x9a   : > { %p673_p11 = scmp.ne.s32.totalorder %s199_s9, %s672_s19  ;;  %p678_p0 = scmp.lt.s32.totalorder %s1052_s13, %s672_s19 }
  0x9c   : > { %p679_p2 = por %p678_p0, %p677_p13 }
  0x9e   : > { %p680_p4 = pnand %p679_p2, %p673_p11 }
  0xa0   : > { %683 = shalt.err (!%p680_p4)  }
  0xa1   : > { %201 = dma.hbm_to_vmem [thread:$0]  %s188_s15, 16, %s199_s9, [#allocation3 + $0x3] }
  0xa2   : > { %s459_s16 = sshll.u32 %s203_s20, 4  ;;  %s889_s26 = smov [#allocation2 + $0x5]  }
  0xa3   : > { %s205_s14 = scalar_lea.hbm %s1205_s1, %s459_s16  ;;  %s232_s0 = sshll.u32 %s889_s26, 4  ;;  %s233_s0 = int_to_ptr.vmem [resolvable:$true] %s232_s0 }
  0xa4   : > { %s684_s10 = scalar_lea.hbm %s205_s14, 16  ;;  %p687_p8 = scmp.lt.u32.totalorder %s205_s14, %s1205_s1 }
  0xa5   : > { %p685_p6 = scmp.ne.s32.totalorder %s205_s14, %s684_s10  ;;  %p688_p9 = scmp.lt.u32.totalorder %s1043_s28, %s684_s10 }
  0xa6   : > { %p690_p12 = scmp.lt.u32.totalorder %s684_s10, %s205_s14 }
  0xa7   : > { %p689_p10 = por %p688_p9, %p687_p8 }
  0xa9   : > { %p691_p1 = por %p690_p12, %p689_p10 }
  0xab   : > { %p692_p3 = pnand %p691_p1, %p685_p6 }
  0xad   : > { %695 = shalt.err (!%p692_p3)  }
  0xae   : > { %s696_s9 = scalar_lea.vmem %s1094_s2, 16  ;;  %p701_p7 = scmp.lt.s32.totalorder %s1094_s2, %s1028_s11 }
  0xaf   : > { %p697_p5 = scmp.ne.s32.totalorder %s1094_s2, %s696_s9  ;;  %p702_p11 = scmp.lt.s32.totalorder %s1052_s13, %s696_s9 }
  0xb1   : > { %p703_p13 = por %p702_p11, %p701_p7 }
  0xb3   : > { %p704_p0 = pnand %p703_p13, %p697_p5 }
  0xb5   : > { %707 = shalt.err (!%p704_p0)  }
  0xb6   : > { %218 = dma.hbm_to_vmem [thread:$0]  %s205_s14, 16, %s1094_s2, [#allocation3 + $0x4] }
  0xb7   : > { %s236_s20 = sadd.s32 6, %s1020_s30  ;;  %s460_s15 = sshll.u32 %s1099_s29, 4 }
  0xb8   : > { %s237_s18 = sld [smem:[#allocation5 + %s236_s20]]  ;;  %s222_s21 = scalar_lea.hbm %s1205_s1, %s460_s15 }
  0xb9   : > { %s708_s8 = scalar_lea.hbm %s222_s21, 16  ;;  %p711_p4 = scmp.lt.u32.totalorder %s222_s21, %s1205_s1 }
  0xba   : > { %p709_p2 = scmp.ne.s32.totalorder %s222_s21, %s708_s8  ;;  %p712_p6 = scmp.lt.u32.totalorder %s1043_s28, %s708_s8 }
  0xbb   : > { %p714_p9 = scmp.lt.u32.totalorder %s708_s8, %s222_s21 }
  0xbc   : > { %p713_p8 = por %p712_p6, %p711_p4 }
  0xbe   : > { %p715_p10 = por %p714_p9, %p713_p8 }
  0xc0   : > { %p716_p12 = pnand %p715_p10, %p709_p2 }
  0xc2   : > { %719 = shalt.err (!%p716_p12)  }
  0xc3   : > { %s720_s2 = scalar_lea.vmem %s233_s0, 16  ;;  %p725_p3 = scmp.lt.s32.totalorder %s233_s0, %s1028_s11 }
  0xc4   : > { %p721_p1 = scmp.ne.s32.totalorder %s233_s0, %s720_s2  ;;  %p726_p5 = scmp.lt.s32.totalorder %s1052_s13, %s720_s2 }
  0xc6   : > { %p727_p7 = por %p726_p5, %p725_p3 }
  0xc8   : > { %p728_p11 = pnand %p727_p7, %p721_p1 }
  0xca   : > { %731 = shalt.err (!%p728_p11)  }
  0xcb   : > { %235 = dma.hbm_to_vmem [thread:$0]  %s222_s21, 16, %s233_s0, [#allocation3 + $0x5] }
  0xcc   : > { %s890_s29 = smov [#allocation2 + $0x6]   ;;  %s253_s12 = sadd.s32 7, %s1020_s30 }
  0xcd   : > { %s249_s14 = sshll.u32 %s890_s29, 4  ;;  %s254_s17 = sld [smem:[#allocation5 + %s253_s12]]  ;;  %s250_s14 = int_to_ptr.vmem [resolvable:$true] %s249_s14 }
  0xce   : > { %s461_s9 = sshll.u32 %s237_s18, 4  ;;  %s891_s20 = smov [#allocation2 + $0x7]  }
  0xcf   : > { %s266_s15 = sshll.u32 %s891_s20, 4  ;;  %s239_s8 = scalar_lea.hbm %s1205_s1, %s461_s9  ;;  %s267_s15 = int_to_ptr.vmem [resolvable:$true] %s266_s15 }
  0xd0   : > { %s732_s26 = scalar_lea.hbm %s239_s8, 16  ;;  %p735_p0 = scmp.lt.u32.totalorder %s239_s8, %s1205_s1 }
  0xd1   : > { %p733_p13 = scmp.ne.s32.totalorder %s239_s8, %s732_s26  ;;  %p736_p2 = scmp.lt.u32.totalorder %s1043_s28, %s732_s26 }
  0xd2   : > { %p738_p6 = scmp.lt.u32.totalorder %s732_s26, %s239_s8 }
  0xd3   : > { %p737_p4 = por %p736_p2, %p735_p0 }
  0xd5   : > { %p739_p8 = por %p738_p6, %p737_p4 }
  0xd7   : > { %p740_p9 = pnand %p739_p8, %p733_p13 }
  0xd9   : > { %743 = shalt.err (!%p740_p9)  }
  0xda   : > { %s744_s30 = scalar_lea.vmem %s250_s14, 16  ;;  %p749_p12 = scmp.lt.s32.totalorder %s250_s14, %s1028_s11 }
  0xdb   : > { %p745_p10 = scmp.ne.s32.totalorder %s250_s14, %s744_s30  ;;  %p750_p1 = scmp.lt.s32.totalorder %s1052_s13, %s744_s30 }
  0xdd   : > { %p751_p3 = por %p750_p1, %p749_p12 }
  0xdf   : > { %p752_p5 = pnand %p751_p3, %p745_p10 }
  0xe1   : > { %755 = shalt.err (!%p752_p5)  }
  0xe2   : > { %252 = dma.hbm_to_vmem [thread:$0]  %s239_s8, 16, %s250_s14, [#allocation3 + $0x6] }
  0xe3   : > { %s462_s0 = sshll.u32 %s254_s17, 4 }
  0xe4   : > { %s256_s29 = scalar_lea.hbm %s1205_s1, %s462_s0 }
  0xe5   : > { %s756_s12 = scalar_lea.hbm %s256_s29, 16  ;;  %p759_p11 = scmp.lt.u32.totalorder %s256_s29, %s1205_s1 }
  0xe6   : > { %p757_p7 = scmp.ne.s32.totalorder %s256_s29, %s756_s12  ;;  %p760_p13 = scmp.lt.u32.totalorder %s1043_s28, %s756_s12 }
  0xe7   : > { %p762_p2 = scmp.lt.u32.totalorder %s756_s12, %s256_s29 }
  0xe8   : > { %p761_p0 = por %p760_p13, %p759_p11 }
  0xea   : > { %p763_p4 = por %p762_p2, %p761_p0 }
  0xec   : > { %p764_p6 = pnand %p763_p4, %p757_p7 }
  0xee   : > { %767 = shalt.err (!%p764_p6)  }
  0xef   : > { %s768_s14 = scalar_lea.vmem %s267_s15, 16  ;;  %p773_p9 = scmp.lt.s32.totalorder %s267_s15, %s1028_s11 }
  0xf0   : > { %p769_p8 = scmp.ne.s32.totalorder %s267_s15, %s768_s14  ;;  %p774_p10 = scmp.lt.s32.totalorder %s1052_s13, %s768_s14 }
  0xf2   : > { %p775_p12 = por %p774_p10, %p773_p9 }
  0xf4   : > { %p776_p1 = pnand %p775_p12, %p769_p8 }
  0xf6   : > { %779 = shalt.err (!%p776_p1)  }
  0xf7   : > { %269 = dma.hbm_to_vmem [thread:$0]  %s256_s29, 16, %s267_s15, [#allocation3 + $0x7] }
  0xf8   : > { %s134_s17 = scalar_lea.vmem [#allocation9], %s1024_s5 }
  0xf9   : > { %838 = dma.done.wait [#allocation3], 16 }
  0xfa   : > { %839 = vsyncadd [#allocation3], 4294967280 }
  0xfb   : > { %840 = dma.done.wait [#allocation3 + $0x1], 16 }
  0xfc   : > { %841 = vsyncadd [#allocation3 + $0x1], 4294967280 }
  0xfd   : > { %842 = dma.done.wait [#allocation3 + $0x2], 16 }
  0xfe   : > { %843 = vsyncadd [#allocation3 + $0x2], 4294967280 }
  0xff   : > { %844 = dma.done.wait [#allocation3 + $0x3], 16 }
 0x100   : > { %845 = vsyncadd [#allocation3 + $0x3], 4294967280 }
 0x101   : > { %846 = dma.done.wait [#allocation3 + $0x4], 16 }
 0x102   : > { %847 = vsyncadd [#allocation3 + $0x4], 4294967280 }
 0x103   : > { %848 = dma.done.wait [#allocation3 + $0x5], 16 }
 0x104   : > { %849 = vsyncadd [#allocation3 + $0x5], 4294967280 }
 0x105   : > { %850 = dma.done.wait [#allocation3 + $0x6], 16 }
 0x106   : > { %851 = vsyncadd [#allocation3 + $0x6], 4294967280 }
 0x107   : > { %852 = dma.done.wait [#allocation3 + $0x7], 16 }
 0x108   : > { %853 = vsyncadd [#allocation3 + $0x7], 4294967280  ;;  %s464_s28 = sshll.u32 %s872_s25, 7  ;;  %s306_s5 = sshll.u32 %s134_s17, 4  ;;  %v287_v0 = vld [vmem:[#allocation2] sm:$0xff]  ;;  %v288_v1 = vld [vmem:[#allocation6] sm:$0xff]  ;;  %s1157_s5 = int_to_ptr.vmem [resolvable:$true] %s306_s5 }
 0x109   : > { %v289_v2 = vadd.f32 %v288_v1, %v287_v0  ;;  %s1155_s15 = scalar_lea.hbm %s1207_s3, %s464_s28  ;;  %s1226_s19 = sand.u32 1, %s864_s23  }
 0x10a   : > { %s292_s16 = scalar_lea.sflag [#allocation8], %s1226_s19  ;;  %s780_s8 = scalar_lea.vmem %s1157_s5, 128 }
 0x10b   : > { %290 = vst [vmem:[%s134_s17] sm:$0xff] %v289_v2  ;;  %p781_p3 = scmp.ne.s32.totalorder %s1157_s5, %s780_s8  ;;  %p1227_p5 = scmp.ne.s32.totalorder %s1218_s4, 0 }
 0x10c   : > { %s892_s25 = smov [#allocation9]  }
 0x10d   : > { %p782_p7 = pnand %p781_p3, %p1227_p5  ;;  %s784_s26 = sshll.u32 %s892_s25, 4  ;;  %s785_s26 = int_to_ptr.vmem [resolvable:$false] %s784_s26 }
 0x10e   : > { %s786_s10 = scalar_lea.vmem %s785_s26, 256  ;;  %p787_p13 = scmp.lt.s32.totalorder %s1157_s5, %s785_s26 }
 0x10f   : > { %p783_p11 = pneg %p782_p7  ;;  %p788_p0 = scmp.lt.s32.totalorder %s786_s10, %s780_s8 }
 0x111   : > { %p789_p2 = por %p788_p0, %p787_p13 }
 0x113   : > { %p790_p4 = pnand %p789_p2, %p783_p11 }
 0x115   : > { %793 = shalt.err (!%p790_p4)
}
 0x116   : > { %s794_s2 = scalar_lea.hbm %s1155_s15, 128  ;;  %s798_s18 = scalar_lea.hbm %s1207_s3, 256 }
 0x117   : > { %p795_p6 = scmp.ne.s32.totalorder %s1155_s15, %s794_s2  ;;  %p799_p10 = scmp.lt.u32.totalorder %s1155_s15, %s1207_s3 }
 0x118   : > { %p800_p12 = scmp.lt.u32.totalorder %s798_s18, %s794_s2  ;;  %p802_p3 = scmp.lt.u32.totalorder %s794_s2, %s1155_s15 }
 0x119   : > { %p796_p8 = pnand %p795_p6, %p1227_p5 }
 0x11a   : > { %p801_p1 = por %p800_p12, %p799_p10 }
 0x11b   : > { %p797_p9 = pneg %p796_p8 }
 0x11c   : > { %p803_p7 = por %p802_p3, %p801_p1 }
 0x11e   : > { %p804_p11 = pnand %p803_p7, %p797_p9 }
 0x120   : > { %807 = shalt.err (!%p804_p11)
}
 0x121   : > { %479 = dma.vmem_to_hbm [thread:$0]  (%p1227_p5), %s1157_s5, 128, %s1155_s15, %s292_s16  }
 0x122 PF: > { %p491_p13 = scmp.ge.s32.totalorder %s880_s27, 2  ;;  %s318_s12 = sand.u32 1, %s860_s22  }
 0x123   : > { %p1228_p0 = scmp.ne.s32.totalorder %s1219_s6, 0  ;;  %s319_s9 = scalar_lea.sflag [#allocation8], %s318_s12 }
 0x125   : > { %p486_p2 = pnand %p491_p13, %p1228_p0 }
 0x127   : > { %855 = dma.done.wait (!%p486_p2), %s319_s9, 128  }
 0x128   : > { %857 = vsyncadd (!%p486_p2), %s319_s9, 4294967168  ;;  %s21_s27 = sadd.s32 1, %s880_s27   ;;  %s1229_s25 = sld [smem:[#allocation39_spill]] }
 0x129   : > { %p18_p4 = scmp.ge.s32.totalorder %s21_s27, 4   ;;  %s1230_s26 = sld [smem:[#allocation40_spill]] }
 0x12a   : > { %s1231_s22 = smov %s864_s23  ;;  %s1232_s23 = smov %s868_s24 }
 0x12b   : > { %s1233_s24 = smov %s978_s7  ;;  %20 = sbr.rel (!%p18_p4) target bundleno = 17 (0x11), region = 123 }
 0x132   :  { %324 = vsyncpa [#allocation7], 1 }
 0x133   :  { %326 = vsyncpa [#allocation7 + $0x1], 1 }
 0x134   :  { %327 = vsyncpa [#allocation8], 1 }
 0x135   :  { %329 = vsyncpa [#allocation8 + $0x1], 1 }
 0x136   :  { %330 = vsyncmov [#allocation3] }
 0x139   :  { %s331_s4 = vpop.sfrf %330 }
 0x13a   :  { %p467_p5 = scmp.ne.s32.totalorder %s331_s4, 0 }
 0x13c   :  { %335 = shalt.err (%p467_p5)  }
 0x13d   :  { %337 = vsyncmov [#allocation3 + $0x1] }
 0x140   :  { %s338_s6 = vpop.sfrf %337 }
 0x141   :  { %p468_p6 = scmp.ne.s32.totalorder %s338_s6, 0 }
 0x143   :  { %342 = shalt.err (%p468_p6)  }
 0x144   :  { %344 = vsyncmov [#allocation3 + $0x2] }
 0x147   :  { %s345_s7 = vpop.sfrf %344 }
 0x148   :  { %p469_p8 = scmp.ne.s32.totalorder %s345_s7, 0 }
 0x14a   :  { %349 = shalt.err (%p469_p8)  }
 0x14b   :  { %351 = vsyncmov [#allocation3 + $0x3] }
 0x14e   :  { %s352_s20 = vpop.sfrf %351 }
 0x14f   :  { %p470_p9 = scmp.ne.s32.totalorder %s352_s20, 0 }
 0x151   :  { %356 = shalt.err (%p470_p9)  }
 0x152   :  { %358 = vsyncmov [#allocation3 + $0x4] }
 0x155   :  { %s359_s1 = vpop.sfrf %358 }
 0x156   :  { %p471_p10 = scmp.ne.s32.totalorder %s359_s1, 0 }
 0x158   :  { %363 = shalt.err (%p471_p10)  }
 0x159   :  { %365 = vsyncmov [#allocation3 + $0x5] }
 0x15c   :  { %s366_s3 = vpop.sfrf %365 }
 0x15d   :  { %p472_p12 = scmp.ne.s32.totalorder %s366_s3, 0 }
 0x15f   :  { %370 = shalt.err (%p472_p12)  }
 0x160   :  { %372 = vsyncmov [#allocation3 + $0x6] }
 0x163   :  { %s373_s22 = vpop.sfrf %372 }
 0x164   :  { %p473_p1 = scmp.ne.s32.totalorder %s373_s22, 0 }
 0x166   :  { %377 = shalt.err (%p473_p1)  }
 0x167   :  { %379 = vsyncmov [#allocation3 + $0x7] }
 0x16a   :  { %s380_s23 = vpop.sfrf %379 }
 0x16b   :  { %p474_p3 = scmp.ne.s32.totalorder %s380_s23, 0 }
 0x16d   :  { %384 = shalt.err (%p474_p3)  }

</bundles_post_ra>
